<compile_context>
chip_gen: v7x
topology: tpu7x:2x2x1
jax: 0.10.0
libtpu: 0.0.40
codegen_flags: <defaults>
</compile_context>

<pallas_src>
import functools

import jax
import jax.numpy as jnp
import numpy as np
from jax.experimental import pallas as pl
from jax.experimental.pallas import tpu as pltpu


def _round_up(v, m):
    return ((v + m - 1) // m) * m


# ----------------------------------------------------------------------------
# Pallas kernel: im2col scratch fill + single GEMM + bias + ReLU (whole batch)
# ----------------------------------------------------------------------------
def _conv_relu_kernel(x_ref, w_ref, b_ref, o_ref, col_ref, *,
                      n, cin, kh, kw, img_w, m_pad):
    # x_ref:   (N, Cin, L)              zero-tail-padded, row-flattened images
    # w_ref:   (Cout, KH*KW*Cin)        weights, K ordered as (kh, kw, cin)
    # b_ref:   (Cout, 1)                bias column
    # o_ref:   (N, Cout, M_pad)         lane-dense (M_pad % 128 == 0) output
    # col_ref: (KH*KW*Cin, N*M_pad)     im2col scratch (VMEM)

    # Fill the im2col slab once: each (tap, image) pair is a single shifted
    # (Cin, M_pad) copy out of the VMEM-resident input slab.  All shift work
    # happens here, up front, instead of in front of dependent matmuls.
    for b in range(n):
        for i in range(kh):
            for j in range(kw):
                tap = i * kw + j
                shift = i * img_w + j
                col_ref[tap * cin:(tap + 1) * cin,
                        b * m_pad:(b + 1) * m_pad] = \
                    x_ref[b, :, shift:shift + m_pad]

    # One MXU pass: (Cout, K) x (K, N*M_pad), f32 accumulation.
    acc = jnp.dot(w_ref[...], col_ref[...],
                  preferred_element_type=jnp.float32)
    acc = jnp.maximum(acc + b_ref[...], 0.0)          # bias + ReLU (VPU)

    # Scatter back per image; column starts are multiples of M_pad (>=128),
    # so every store stays lane-aligned and unmasked.
    for b in range(n):
        o_ref[b] = acc[:, b * m_pad:(b + 1) * m_pad].astype(o_ref.dtype)


# ----------------------------------------------------------------------------
# Wrapper
# ----------------------------------------------------------------------------
@jax.jit
def conv_block_forward(x, weight, bias):
    """ReLU(Conv2d(x)), stride 1 / no padding (nn.Conv2d defaults).

    x: (N, Cin, H, W) f32, weight: (Cout, Cin, KH, KW) f32, bias: (Cout,) f32.
    """
    n, cin, h, w = x.shape
    cout, _, kh, kw = weight.shape
    oh, ow = h - kh + 1, w - kw + 1

    # "Wide" flattened output: one value per (y, x') with x' over the FULL
    # width W; M padded to a lane multiple so stores are unmasked.
    m = oh * w
    m_pad = _round_up(m, 128)
    halo = (kh - 1) * w + (kw - 1)
    l = m_pad + halo                      # max flat index the kernel reads + 1
    k = kh * kw * cin                     # contraction length (36)

    x_flat = x.reshape(n, cin, h * w)
    x_flat = jnp.pad(x_flat, ((0, 0), (0, 0), (0, l - h * w)))  # tiny tail pad

    # Single lane-aligned weight tile; K ordered (kh, kw, cin) to match the
    # im2col scratch row layout.
    w2d = weight.transpose(0, 2, 3, 1).reshape(cout, k).astype(jnp.float32)
    b_col = bias.reshape(cout, 1).astype(jnp.float32)

    kernel = functools.partial(_conv_relu_kernel,
                               n=n, cin=cin, kh=kh, kw=kw,
                               img_w=w, m_pad=m_pad)

    # TODO(synk): if this kernel is ever scaled to realistic conv sizes
    # (large H/W/Cin), add a grid axis over the flat output dimension (M) so
    # the per-step VMEM footprint stays within v7x's 64 MiB.
    out = pl.pallas_call(
        kernel,
        out_shape=jax.ShapeDtypeStruct((n, cout, m_pad), jnp.float32),
        grid_spec=pltpu.PrefetchScalarGridSpec(
            num_scalar_prefetch=0,
            grid=(1,),                               # whole batch in one step
            in_specs=[
                pl.BlockSpec((n, cin, l), lambda i: (0, 0, 0)),
                pl.BlockSpec((cout, k), lambda i: (0, 0)),
                pl.BlockSpec((cout, 1), lambda i: (0, 0)),
            ],
            out_specs=pl.BlockSpec((n, cout, m_pad), lambda i: (0, 0, 0)),
            scratch_shapes=[pltpu.VMEM((k, n * m_pad), jnp.float32)],
        ),
        compiler_params=pltpu.CompilerParams(
            dimension_semantics=("arbitrary",)),
    )(x_flat, w2d, b_col)

    # (N, Cout, M_pad) is already NCHW-ordered; drop the lane padding and the
    # wide-row columns x' >= OW (they contain wrapped/garbage data by design).
    out = out[:, :, :m].reshape(n, cout, oh, w)[:, :, :, :ow]
    return out


# ----------------------------------------------------------------------------
# Reference (pure JAX) for verification
# ----------------------------------------------------------------------------
def _reference(x, weight, bias):
    y = jax.lax.conv_general_dilated(
        x, weight, window_strides=(1, 1), padding="VALID",
        dimension_numbers=("NCHW", "OIHW", "NCHW"))
    y = y + bias.reshape(1, -1, 1, 1)
    return jnp.maximum(y, 0.0)


if __name__ == "__main__":
    # Module config: conv_block(in_channels=4, out_channels=8, kernel_size=3)
    N, C_IN, H, W = 2, 4, 16, 16
    C_OUT, KH, KW = 8, 3, 3

    key = jax.random.PRNGKey(0)
    kx, kw_, kb = jax.random.split(key, 3)

    x = jax.random.normal(kx, (N, C_IN, H, W), dtype=jnp.float32)
    # Deterministic Kaiming-uniform-style init (synthetic, no checkpoint).
    fan_in = C_IN * KH * KW
    bound = 1.0 / np.sqrt(fan_in)
    weight = jax.random.uniform(kw_, (C_OUT, C_IN, KH, KW),
                                minval=-bound, maxval=bound, dtype=jnp.float32)
    bias = jax.random.uniform(kb, (C_OUT,),
                              minval=-bound, maxval=bound, dtype=jnp.float32)

    out = conv_block_forward(x, weight, bias)
    out = jax.block_until_ready(out)

    ref = _reference(x, weight, bias)
    np.testing.assert_allclose(np.asarray(out), np.asarray(ref),
                               rtol=1e-5, atol=1e-5)
    assert out.shape == (N, C_OUT, H - KH + 1, W - KW + 1)

    print("KERNEL_OK")
</pallas_src>

<mosaic_0001>
module attributes {stable_mosaic.version = 11 : i64} {
  func.func @_conv_relu_kernel(%arg0: i32, %arg1: memref<2x4x290xf32, #tpu.memory_space<vmem>>, %arg2: memref<8x36xf32, #tpu.memory_space<vmem>>, %arg3: memref<8x1xf32, #tpu.memory_space<vmem>>, %arg4: memref<2x8x256xf32, #tpu.memory_space<vmem>>, %arg5: memref<36x512xf32, #tpu.memory_space<vmem>>) attributes {dimension_semantics = [#tpu.dimension_semantics<arbitrary>], iteration_bounds = array<i64: 1>, scalar_prefetch = 0 : i64, scratch_operands = 1 : i64, tpu.core_type = #tpu.core_type<tc>, window_params = [{pipeline_mode = #tpu.pipeline_mode<synchronous>, transform_indices = @transform_0, window_bounds = array<i64: 2, 4, 290>}, {pipeline_mode = #tpu.pipeline_mode<synchronous>, transform_indices = @transform_1, window_bounds = array<i64: 8, 36>}, {pipeline_mode = #tpu.pipeline_mode<synchronous>, transform_indices = @transform_2, window_bounds = array<i64: 8, 1>}, {pipeline_mode = #tpu.pipeline_mode<synchronous>, transform_indices = @transform_3, window_bounds = array<i64: 2, 8, 256>}]} {
    %c0 = arith.constant 0 : index
    %c0_0 = arith.constant 0 : index
    %c0_1 = arith.constant 0 : index
    %0 = vector.load %arg1[%c0, %c0_0, %c0_1] : memref<2x4x290xf32, #tpu.memory_space<vmem>>, vector<1x4x256xf32>
    %1 = vector.shape_cast %0 : vector<1x4x256xf32> to vector<4x256xf32>
    %c0_2 = arith.constant 0 : index
    %c0_3 = arith.constant 0 : index
    %2 = vector.load %arg5[%c0_2, %c0_3] : memref<36x512xf32, #tpu.memory_space<vmem>>, vector<4x256xf32>
    tpu.vector_store %arg5[%c0_2, %c0_3], %1 {strides = array<i32>} : memref<36x512xf32, #tpu.memory_space<vmem>>, vector<4x256xf32>,
    %c0_4 = arith.constant 0 : index
    %c0_5 = arith.constant 0 : index
    %c1 = arith.constant 1 : index
    %3 = vector.load %arg1[%c0_4, %c0_5, %c1] : memref<2x4x290xf32, #tpu.memory_space<vmem>>, vector<1x4x256xf32>
    %4 = vector.shape_cast %3 : vector<1x4x256xf32> to vector<4x256xf32>
    %c4 = arith.constant 4 : index
    %c0_6 = arith.constant 0 : index
    %5 = vector.load %arg5[%c4, %c0_6] : memref<36x512xf32, #tpu.memory_space<vmem>>, vector<4x256xf32>
    tpu.vector_store %arg5[%c4, %c0_6], %4 {strides = array<i32>} : memref<36x512xf32, #tpu.memory_space<vmem>>, vector<4x256xf32>,
    %c0_7 = arith.constant 0 : index
    %c0_8 = arith.constant 0 : index
    %c2 = arith.constant 2 : index
    %6 = vector.load %arg1[%c0_7, %c0_8, %c2] : memref<2x4x290xf32, #tpu.memory_space<vmem>>, vector<1x4x256xf32>
    %7 = vector.shape_cast %6 : vector<1x4x256xf32> to vector<4x256xf32>
    %c8 = arith.constant 8 : index
    %c0_9 = arith.constant 0 : index
    %8 = vector.load %arg5[%c8, %c0_9] : memref<36x512xf32, #tpu.memory_space<vmem>>, vector<4x256xf32>
    tpu.vector_store %arg5[%c8, %c0_9], %7 {strides = array<i32>} : memref<36x512xf32, #tpu.memory_space<vmem>>, vector<4x256xf32>,
    %c0_10 = arith.constant 0 : index
    %c0_11 = arith.constant 0 : index
    %c16 = arith.constant 16 : index
    %9 = vector.load %arg1[%c0_10, %c0_11, %c16] : memref<2x4x290xf32, #tpu.memory_space<vmem>>, vector<1x4x256xf32>
    %10 = vector.shape_cast %9 : vector<1x4x256xf32> to vector<4x256xf32>
    %c12 = arith.constant 12 : index
    %c0_12 = arith.constant 0 : index
    %11 = vector.load %arg5[%c12, %c0_12] : memref<36x512xf32, #tpu.memory_space<vmem>>, vector<4x256xf32>
    tpu.vector_store %arg5[%c12, %c0_12], %10 {strides = array<i32>} : memref<36x512xf32, #tpu.memory_space<vmem>>, vector<4x256xf32>,
    %c0_13 = arith.constant 0 : index
    %c0_14 = arith.constant 0 : index
    %c17 = arith.constant 17 : index
    %12 = vector.load %arg1[%c0_13, %c0_14, %c17] : memref<2x4x290xf32, #tpu.memory_space<vmem>>, vector<1x4x256xf32>
    %13 = vector.shape_cast %12 : vector<1x4x256xf32> to vector<4x256xf32>
    %c16_15 = arith.constant 16 : index
    %c0_16 = arith.constant 0 : index
    %14 = vector.load %arg5[%c16_15, %c0_16] : memref<36x512xf32, #tpu.memory_space<vmem>>, vector<4x256xf32>
    tpu.vector_store %arg5[%c16_15, %c0_16], %13 {strides = array<i32>} : memref<36x512xf32, #tpu.memory_space<vmem>>, vector<4x256xf32>,
    %c0_17 = arith.constant 0 : index
    %c0_18 = arith.constant 0 : index
    %c18 = arith.constant 18 : index
    %15 = vector.load %arg1[%c0_17, %c0_18, %c18] : memref<2x4x290xf32, #tpu.memory_space<vmem>>, vector<1x4x256xf32>
    %16 = vector.shape_cast %15 : vector<1x4x256xf32> to vector<4x256xf32>
    %c20 = arith.constant 20 : index
    %c0_19 = arith.constant 0 : index
    %17 = vector.load %arg5[%c20, %c0_19] : memref<36x512xf32, #tpu.memory_space<vmem>>, vector<4x256xf32>
    tpu.vector_store %arg5[%c20, %c0_19], %16 {strides = array<i32>} : memref<36x512xf32, #tpu.memory_space<vmem>>, vector<4x256xf32>,
    %c0_20 = arith.constant 0 : index
    %c0_21 = arith.constant 0 : index
    %c32 = arith.constant 32 : index
    %18 = vector.load %arg1[%c0_20, %c0_21, %c32] : memref<2x4x290xf32, #tpu.memory_space<vmem>>, vector<1x4x256xf32>
    %19 = vector.shape_cast %18 : vector<1x4x256xf32> to vector<4x256xf32>
    %c24 = arith.constant 24 : index
    %c0_22 = arith.constant 0 : index
    %20 = vector.load %arg5[%c24, %c0_22] : memref<36x512xf32, #tpu.memory_space<vmem>>, vector<4x256xf32>
    tpu.vector_store %arg5[%c24, %c0_22], %19 {strides = array<i32>} : memref<36x512xf32, #tpu.memory_space<vmem>>, vector<4x256xf32>,
    %c0_23 = arith.constant 0 : index
    %c0_24 = arith.constant 0 : index
    %c33 = arith.constant 33 : index
    %21 = vector.load %arg1[%c0_23, %c0_24, %c33] : memref<2x4x290xf32, #tpu.memory_space<vmem>>, vector<1x4x256xf32>
    %22 = vector.shape_cast %21 : vector<1x4x256xf32> to vector<4x256xf32>
    %c28 = arith.constant 28 : index
    %c0_25 = arith.constant 0 : index
    %23 = vector.load %arg5[%c28, %c0_25] : memref<36x512xf32, #tpu.memory_space<vmem>>, vector<4x256xf32>
    tpu.vector_store %arg5[%c28, %c0_25], %22 {strides = array<i32>} : memref<36x512xf32, #tpu.memory_space<vmem>>, vector<4x256xf32>,
    %c0_26 = arith.constant 0 : index
    %c0_27 = arith.constant 0 : index
    %c34 = arith.constant 34 : index
    %24 = vector.load %arg1[%c0_26, %c0_27, %c34] : memref<2x4x290xf32, #tpu.memory_space<vmem>>, vector<1x4x256xf32>
    %25 = vector.shape_cast %24 : vector<1x4x256xf32> to vector<4x256xf32>
    %c32_28 = arith.constant 32 : index
    %c0_29 = arith.constant 0 : index
    %26 = vector.load %arg5[%c32_28, %c0_29] : memref<36x512xf32, #tpu.memory_space<vmem>>, vector<4x256xf32>
    tpu.vector_store %arg5[%c32_28, %c0_29], %25 {strides = array<i32>} : memref<36x512xf32, #tpu.memory_space<vmem>>, vector<4x256xf32>,
    %c1_30 = arith.constant 1 : index
    %c0_31 = arith.constant 0 : index
    %c0_32 = arith.constant 0 : index
    %27 = vector.load %arg1[%c1_30, %c0_31, %c0_32] : memref<2x4x290xf32, #tpu.memory_space<vmem>>, vector<1x4x256xf32>
    %28 = vector.shape_cast %27 : vector<1x4x256xf32> to vector<4x256xf32>
    %c0_33 = arith.constant 0 : index
    %c256 = arith.constant 256 : index
    %29 = vector.load %arg5[%c0_33, %c256] : memref<36x512xf32, #tpu.memory_space<vmem>>, vector<4x256xf32>
    tpu.vector_store %arg5[%c0_33, %c256], %28 {strides = array<i32>} : memref<36x512xf32, #tpu.memory_space<vmem>>, vector<4x256xf32>,
    %c1_34 = arith.constant 1 : index
    %c0_35 = arith.constant 0 : index
    %c1_36 = arith.constant 1 : index
    %30 = vector.load %arg1[%c1_34, %c0_35, %c1_36] : memref<2x4x290xf32, #tpu.memory_space<vmem>>, vector<1x4x256xf32>
    %31 = vector.shape_cast %30 : vector<1x4x256xf32> to vector<4x256xf32>
    %c4_37 = arith.constant 4 : index
    %c256_38 = arith.constant 256 : index
    %32 = vector.load %arg5[%c4_37, %c256_38] : memref<36x512xf32, #tpu.memory_space<vmem>>, vector<4x256xf32>
    tpu.vector_store %arg5[%c4_37, %c256_38], %31 {strides = array<i32>} : memref<36x512xf32, #tpu.memory_space<vmem>>, vector<4x256xf32>,
    %c1_39 = arith.constant 1 : index
    %c0_40 = arith.constant 0 : index
    %c2_41 = arith.constant 2 : index
    %33 = vector.load %arg1[%c1_39, %c0_40, %c2_41] : memref<2x4x290xf32, #tpu.memory_space<vmem>>, vector<1x4x256xf32>
    %34 = vector.shape_cast %33 : vector<1x4x256xf32> to vector<4x256xf32>
    %c8_42 = arith.constant 8 : index
    %c256_43 = arith.constant 256 : index
    %35 = vector.load %arg5[%c8_42, %c256_43] : memref<36x512xf32, #tpu.memory_space<vmem>>, vector<4x256xf32>
    tpu.vector_store %arg5[%c8_42, %c256_43], %34 {strides = array<i32>} : memref<36x512xf32, #tpu.memory_space<vmem>>, vector<4x256xf32>,
    %c1_44 = arith.constant 1 : index
    %c0_45 = arith.constant 0 : index
    %c16_46 = arith.constant 16 : index
    %36 = vector.load %arg1[%c1_44, %c0_45, %c16_46] : memref<2x4x290xf32, #tpu.memory_space<vmem>>, vector<1x4x256xf32>
    %37 = vector.shape_cast %36 : vector<1x4x256xf32> to vector<4x256xf32>
    %c12_47 = arith.constant 12 : index
    %c256_48 = arith.constant 256 : index
    %38 = vector.load %arg5[%c12_47, %c256_48] : memref<36x512xf32, #tpu.memory_space<vmem>>, vector<4x256xf32>
    tpu.vector_store %arg5[%c12_47, %c256_48], %37 {strides = array<i32>} : memref<36x512xf32, #tpu.memory_space<vmem>>, vector<4x256xf32>,
    %c1_49 = arith.constant 1 : index
    %c0_50 = arith.constant 0 : index
    %c17_51 = arith.constant 17 : index
    %39 = vector.load %arg1[%c1_49, %c0_50, %c17_51] : memref<2x4x290xf32, #tpu.memory_space<vmem>>, vector<1x4x256xf32>
    %40 = vector.shape_cast %39 : vector<1x4x256xf32> to vector<4x256xf32>
    %c16_52 = arith.constant 16 : index
    %c256_53 = arith.constant 256 : index
    %41 = vector.load %arg5[%c16_52, %c256_53] : memref<36x512xf32, #tpu.memory_space<vmem>>, vector<4x256xf32>
    tpu.vector_store %arg5[%c16_52, %c256_53], %40 {strides = array<i32>} : memref<36x512xf32, #tpu.memory_space<vmem>>, vector<4x256xf32>,
    %c1_54 = arith.constant 1 : index
    %c0_55 = arith.constant 0 : index
    %c18_56 = arith.constant 18 : index
    %42 = vector.load %arg1[%c1_54, %c0_55, %c18_56] : memref<2x4x290xf32, #tpu.memory_space<vmem>>, vector<1x4x256xf32>
    %43 = vector.shape_cast %42 : vector<1x4x256xf32> to vector<4x256xf32>
    %c20_57 = arith.constant 20 : index
    %c256_58 = arith.constant 256 : index
    %44 = vector.load %arg5[%c20_57, %c256_58] : memref<36x512xf32, #tpu.memory_space<vmem>>, vector<4x256xf32>
    tpu.vector_store %arg5[%c20_57, %c256_58], %43 {strides = array<i32>} : memref<36x512xf32, #tpu.memory_space<vmem>>, vector<4x256xf32>,
    %c1_59 = arith.constant 1 : index
    %c0_60 = arith.constant 0 : index
    %c32_61 = arith.constant 32 : index
    %45 = vector.load %arg1[%c1_59, %c0_60, %c32_61] : memref<2x4x290xf32, #tpu.memory_space<vmem>>, vector<1x4x256xf32>
    %46 = vector.shape_cast %45 : vector<1x4x256xf32> to vector<4x256xf32>
    %c24_62 = arith.constant 24 : index
    %c256_63 = arith.constant 256 : index
    %47 = vector.load %arg5[%c24_62, %c256_63] : memref<36x512xf32, #tpu.memory_space<vmem>>, vector<4x256xf32>
    tpu.vector_store %arg5[%c24_62, %c256_63], %46 {strides = array<i32>} : memref<36x512xf32, #tpu.memory_space<vmem>>, vector<4x256xf32>,
    %c1_64 = arith.constant 1 : index
    %c0_65 = arith.constant 0 : index
    %c33_66 = arith.constant 33 : index
    %48 = vector.load %arg1[%c1_64, %c0_65, %c33_66] : memref<2x4x290xf32, #tpu.memory_space<vmem>>, vector<1x4x256xf32>
    %49 = vector.shape_cast %48 : vector<1x4x256xf32> to vector<4x256xf32>
    %c28_67 = arith.constant 28 : index
    %c256_68 = arith.constant 256 : index
    %50 = vector.load %arg5[%c28_67, %c256_68] : memref<36x512xf32, #tpu.memory_space<vmem>>, vector<4x256xf32>
    tpu.vector_store %arg5[%c28_67, %c256_68], %49 {strides = array<i32>} : memref<36x512xf32, #tpu.memory_space<vmem>>, vector<4x256xf32>,
    %c1_69 = arith.constant 1 : index
    %c0_70 = arith.constant 0 : index
    %c34_71 = arith.constant 34 : index
    %51 = vector.load %arg1[%c1_69, %c0_70, %c34_71] : memref<2x4x290xf32, #tpu.memory_space<vmem>>, vector<1x4x256xf32>
    %52 = vector.shape_cast %51 : vector<1x4x256xf32> to vector<4x256xf32>
    %c32_72 = arith.constant 32 : index
    %c256_73 = arith.constant 256 : index
    %53 = vector.load %arg5[%c32_72, %c256_73] : memref<36x512xf32, #tpu.memory_space<vmem>>, vector<4x256xf32>
    tpu.vector_store %arg5[%c32_72, %c256_73], %52 {strides = array<i32>} : memref<36x512xf32, #tpu.memory_space<vmem>>, vector<4x256xf32>,
    %c0_74 = arith.constant 0 : index
    %c0_75 = arith.constant 0 : index
    %54 = vector.load %arg2[%c0_74, %c0_75] : memref<8x36xf32, #tpu.memory_space<vmem>>, vector<8x36xf32>
    %c0_76 = arith.constant 0 : index
    %c0_77 = arith.constant 0 : index
    %55 = vector.load %arg5[%c0_76, %c0_77] : memref<36x512xf32, #tpu.memory_space<vmem>>, vector<36x512xf32>
    %cst = arith.constant dense<0.000000e+00> : vector<8x512xf32>
    %56 = tpu.matmul %54, %55, %cst {dimension_numbers = #tpu.dot_dimension_numbers<[1], [0], [0], [1], [0, 0, 1, 1], [], []>} : vector<8x36xf32>, vector<36x512xf32>, vector<8x512xf32> -> vector<8x512xf32>
    %c0_78 = arith.constant 0 : index
    %c0_79 = arith.constant 0 : index
    %57 = vector.load %arg3[%c0_78, %c0_79] : memref<8x1xf32, #tpu.memory_space<vmem>>, vector<8x1xf32>
    %58 = vector.broadcast %57 : vector<8x1xf32> to vector<8x512xf32>
    %59 = arith.addf %56, %58 : vector<8x512xf32>
    %cst_80 = arith.constant 0.000000e+00 : f32
    %60 = vector.broadcast %cst_80 : f32 to vector<8x512xf32>
    %61 = arith.maximumf %59, %60 : vector<8x512xf32>
    %62 = vector.extract_strided_slice %61 {offsets = [0, 0], sizes = [8, 256], strides = [1, 1]} : vector<8x512xf32> to vector<8x256xf32>
    %c0_81 = arith.constant 0 : index
    %c0_82 = arith.constant 0 : index
    %c0_83 = arith.constant 0 : index
    %63 = vector.load %arg4[%c0_81, %c0_82, %c0_83] : memref<2x8x256xf32, #tpu.memory_space<vmem>>, vector<1x8x256xf32>
    %64 = vector.shape_cast %63 : vector<1x8x256xf32> to vector<8x256xf32>
    %65 = vector.shape_cast %62 : vector<8x256xf32> to vector<1x8x256xf32>
    tpu.vector_store %arg4[%c0_81, %c0_82, %c0_83], %65 {strides = array<i32>} : memref<2x8x256xf32, #tpu.memory_space<vmem>>, vector<1x8x256xf32>,
    %66 = vector.extract_strided_slice %61 {offsets = [0, 256], sizes = [8, 256], strides = [1, 1]} : vector<8x512xf32> to vector<8x256xf32>
    %c1_84 = arith.constant 1 : index
    %c0_85 = arith.constant 0 : index
    %c0_86 = arith.constant 0 : index
    %67 = vector.load %arg4[%c1_84, %c0_85, %c0_86] : memref<2x8x256xf32, #tpu.memory_space<vmem>>, vector<1x8x256xf32>
    %68 = vector.shape_cast %67 : vector<1x8x256xf32> to vector<8x256xf32>
    %69 = vector.shape_cast %66 : vector<8x256xf32> to vector<1x8x256xf32>
    tpu.vector_store %arg4[%c1_84, %c0_85, %c0_86], %69 {strides = array<i32>} : memref<2x8x256xf32, #tpu.memory_space<vmem>>, vector<1x8x256xf32>,
    return
  }
  func.func @transform_0(%arg0: i32) -> (i32, i32, i32) {
    %c0_i32 = arith.constant 0 : i32
    %c0_i32_0 = arith.constant 0 : i32
    %c0_i32_1 = arith.constant 0 : i32
    %c0_i32_2 = arith.constant 0 : i32
    return %c0_i32, %c0_i32_0, %c0_i32_1 : i32, i32, i32
  }
  func.func @transform_1(%arg0: i32) -> (i32, i32) {
    %c0_i32 = arith.constant 0 : i32
    %c0_i32_0 = arith.constant 0 : i32
    %c0_i32_1 = arith.constant 0 : i32
    return %c0_i32, %c0_i32_0 : i32, i32
  }
  func.func @transform_2(%arg0: i32) -> (i32, i32) {
    %c0_i32 = arith.constant 0 : i32
    %c0_i32_0 = arith.constant 0 : i32
    %c0_i32_1 = arith.constant 0 : i32
    return %c0_i32, %c0_i32_0 : i32, i32
  }
  func.func @transform_3(%arg0: i32) -> (i32, i32, i32) {
    %c0_i32 = arith.constant 0 : i32
    %c0_i32_0 = arith.constant 0 : i32
    %c0_i32_1 = arith.constant 0 : i32
    %c0_i32_2 = arith.constant 0 : i32
    return %c0_i32, %c0_i32_0, %c0_i32_1 : i32, i32, i32
  }
}

</mosaic_0001>

<bundles_post_ra>
// kernel: conv_block_forward.1
= control target key start
LH: loop header
LB: loop body
LE: loop exit
PB: predicated region body
PF: predicated region fallthrough
CT: control target
= control target key end

     0   :  { %s578_s16 = smov 126   ;;  %s579_s17 = smov 127   ;;  %v586_v22 = vmov 0.0   ;;  %v587_v23 = vmov 0   ;;  %vm50_vm0 = vcmask 1031168   ;;  %vm32_vm1 = vcmask 1039360   ;;  %s772_s0 = inlined_call_operand.vmem [shape: f32[2,4,290], index: 0, kind: input, shape index: {}]   ;;  %s773_s2 = inlined_call_operand.vmem [shape: f32[8,1], index: 2, kind: input, shape index: {}]   ;;  %s774_s1 = inlined_call_operand.vmem [shape: f32[8,36], index: 1, kind: input, shape index: {}]   ;;  %s775_s3 = inlined_call_operand.vmem [shape: f32[2,8,256], index: 3, kind: output, shape index: {}]  }
   0x1   :  { %v40_v0 = vld [vmem:[%s772_s0 + $0x8] sm:$0xf]  ;;  %v614_v1 = vld [vmem:[%s772_s0] sm:$0xff]  ;;  %v629_v4 = vld [vmem:[%s772_s0 + $0xc] sm:$0xff]  ;;  %s580_s24 = smov 112   ;;  %s581_s6 = smov 111   ;;  %423 = vmatprep.mubr.f32.mxu0 %v586_v22  ;;  %494 = vmatprep.mubr.f32.mxu1 %v586_v22 }
   0x2   :  { %48 = vrot.lane.b32.xlu1 %v40_v0, %s578_s16  ;;  %28 = vrot.lane.b32.xlu0 %v614_v1, %s579_s17  ;;  %v620_v2 = vcombine.high %v614_v1, %v614_v1  ;;  %v568_v3 = vld [vmem:[%s772_s0 + $0x8] ss:$0 sps:$4 sm:$0xff]   ;;  %18 = vst [vmem:[#allocation2] sm:$0xf] %v614_v1  ;;  %v634_v5 = vcombine.high %v629_v4, %v629_v4  ;;  %173 = vst [vmem:[#allocation2 + $0x10] sm:$0xf] %v629_v4 }
   0x3   :  { %v569_v6 = vld [vmem:[%s772_s0 + $0x8] ss:$0 sps:$4 sm:$0xff]   ;;  %v570_v7 = vld [vmem:[%s772_s0 + $0x14] ss:$0 sps:$4 sm:$0xff]   ;;  %v24_v10 = vcombine.low %v614_v1, %v614_v1  ;;  %v179_v11 = vcombine.low %v629_v4, %v629_v4  ;;  %s582_s9 = smov 110   ;;  %s583_s12 = smov 96   ;;  %565 = vset.pattern.permute.xlu0 %v587_v23 }
   0x4   :  { %19 = vst [vmem:[#allocation2 + $0x8] sm:$0xf] %v620_v2  ;;  %174 = vst [vmem:[#allocation2 + $0x18] sm:$0xf] %v634_v5  ;;  %v518_v8 = vld [vmem:[%s772_s0 + $0x14] sm:$0xf] }
   0x5   :  { %v573_v9 = vld [vmem:[%s772_s0 + $0x14] ss:$0 sps:$4 sm:$0xff]   ;;  %v77_v12 = vld [vmem:[%s772_s0 + $0x8] sm:$0xf]  ;;  %s584_s15 = smov 95   ;;  %s585_s26 = smov 94  }
   0x6   :  { %46 = vrot.lane.b32.xlu1 %v620_v2, %s578_s16  ;;  %30 = vrot.lane.b32.xlu0 %v568_v3, %s579_s17  ;;  %v574_v13 = vld [vmem:[%s772_s0 + $0x8] ss:$0 sps:$4 sm:$0xff]   ;;  %v522_v16 = vld [vmem:[%s772_s0 + $0x14] sm:$0xf]  ;;  %vm69_vm2 = vcmask 916480   ;;  %vm87_vm3 = vcmask 908288  }
   0x7   :  { %v114_v14 = vld [vmem:[%s772_s0 + $0x8] sm:$0xf]  ;;  %v576_v17 = vld [vmem:[%s772_s0 + $0x14] ss:$0 sps:$4 sm:$0xff]   ;;  %v336_v24 = vld [vmem:[%s773_s2] sm:$0xff]  ;;  %vm106_vm4 = vcmask 900096  }
   0x8   :  { %v575_v15 = vld [vmem:[%s772_s0 + $0x8] ss:$0 sps:$4 sm:$0xff]   ;;  %v526_v18 = vld [vmem:[%s772_s0 + $0x14] sm:$0xf]  ;;  %vm124_vm5 = vcmask 785408   ;;  %vm143_vm6 = vcmask 777216  }
   0x9   :  { %v577_v19 = vld [vmem:[%s772_s0 + $0x14] ss:$0 sps:$4 sm:$0xff]   ;;  %v151_v20 = vld [vmem:[%s772_s0 + $0x8] sm:$0xf]  ;;  %vm161_vm7 = vcmask 769024   ;;  %vm346_vm8 = vcmask 1043456  }
   0xa   :  { %67 = vrot.lane.b32.xlu1 %v569_v6, %s580_s24  ;;  %65 = vrot.lane.b32.xlu0 %v614_v1, %s580_s24  ;;  %v530_v21 = vld [vmem:[%s772_s0 + $0x14] sm:$0xf]  ;;  %vm342_vm9 = vcmask 293888  }
   0xe   :  { %185 = vrot.lane.b32.xlu1 %v570_v7, %s579_s17  ;;  %183 = vrot.lane.b32.xlu0 %v629_v4, %s579_s17 }
  0x12   :  { %202 = vrot.lane.b32.xlu1 %v518_v8, %s578_s16  ;;  %200 = vrot.lane.b32.xlu0 %v634_v5, %s578_s16 }
  0x16   :  { %220 = vrot.lane.b32.xlu1 %v573_v9, %s580_s24  ;;  %218 = vrot.lane.b32.xlu0 %v629_v4, %s580_s24 }
  0x1a   :  { %44 = vrot.lane.b32.xlu1 %v614_v1, %s578_s16  ;;  %26 = vrot.lane.b32.xlu0 %v24_v10, %s579_s17 }
  0x1e   :  { %181 = vrot.lane.b32.xlu1 %v179_v11, %s579_s17  ;;  %63 = vrot.lane.b32.xlu0 %v24_v10, %s580_s24 }
  0x22   :  { %216 = vrot.lane.b32.xlu1 %v179_v11, %s580_s24  ;;  %198 = vrot.lane.b32.xlu0 %v629_v4, %s578_s16 }
  0x26   :  { %85 = vrot.lane.b32.xlu1 %v77_v12, %s581_s6  ;;  %83 = vrot.lane.b32.xlu0 %v620_v2, %s581_s6 }
  0x2a   :  { %104 = vrot.lane.b32.xlu1 %v574_v13, %s582_s9  ;;  %102 = vrot.lane.b32.xlu0 %v614_v1, %s582_s9 }
  0x2e   :  { %122 = vrot.lane.b32.xlu1 %v114_v14, %s583_s12  ;;  %120 = vrot.lane.b32.xlu0 %v620_v2, %s583_s12 }
  0x32   :  { %141 = vrot.lane.b32.xlu1 %v575_v15, %s584_s15  ;;  %139 = vrot.lane.b32.xlu0 %v614_v1, %s584_s15 }
  0x36   :  { %237 = vrot.lane.b32.xlu1 %v522_v16, %s581_s6  ;;  %235 = vrot.lane.b32.xlu0 %v634_v5, %s581_s6 }
  0x3a   :  { %255 = vrot.lane.b32.xlu1 %v576_v17, %s582_s9  ;;  %253 = vrot.lane.b32.xlu0 %v629_v4, %s582_s9 }
  0x3e   :  { %272 = vrot.lane.b32.xlu1 %v526_v18, %s583_s12  ;;  %270 = vrot.lane.b32.xlu0 %v634_v5, %s583_s12 }
  0x42   :  { %290 = vrot.lane.b32.xlu1 %v577_v19, %s584_s15  ;;  %288 = vrot.lane.b32.xlu0 %v629_v4, %s584_s15 }
  0x46   :  { %100 = vrot.lane.b32.xlu1 %v24_v10, %s582_s9  ;;  %81 = vrot.lane.b32.xlu0 %v614_v1, %s581_s6 }
  0x4a   :  { %137 = vrot.lane.b32.xlu1 %v24_v10, %s584_s15  ;;  %118 = vrot.lane.b32.xlu0 %v614_v1, %s583_s12 }
  0x4e   :  { %251 = vrot.lane.b32.xlu1 %v179_v11, %s582_s9  ;;  %233 = vrot.lane.b32.xlu0 %v629_v4, %s581_s6 }
  0x52   :  { %286 = vrot.lane.b32.xlu1 %v179_v11, %s584_s15  ;;  %268 = vrot.lane.b32.xlu0 %v629_v4, %s583_s12 }
  0x56   :  { %159 = vrot.lane.b32.xlu1 %v151_v20, %s585_s26  ;;  %157 = vrot.lane.b32.xlu0 %v620_v2, %s585_s26 }
  0x5a   :  { %307 = vrot.lane.b32.xlu1 %v530_v21, %s585_s26  ;;  %305 = vrot.lane.b32.xlu0 %v634_v5, %s585_s26 }
  0x5e   :  { %303 = vrot.lane.b32.xlu1 %v629_v4, %s585_s26  ;;  %155 = vrot.lane.b32.xlu0 %v614_v1, %s585_s26 }
  0x62   :  { %339 = vperm.xlu0 %565, %v336_v24  }
  0x74   :  { %v49_v25 = vpop.permute.xlu1 %48  ;;  %v29_v26 = vpop.permute.xlu0 %28 }
  0x78   :  { %v47_v27 = vpop.permute.xlu1 %46  ;;  %v31_v28 = vpop.permute.xlu0 %30 }
  0x79   :  { %v52_v29 = vsel %vm50_vm0, %v47_v27, %v49_v25  ;;  %v34_v30 = vsel %vm32_vm1, %v29_v26, %v31_v28 }
  0x7a   :  { %56 = vst [vmem:[#allocation2 + $0x28] sm:$0xf] %v52_v29  ;;  %38 = vst [vmem:[#allocation2 + $0x8] sm:$0xf0] %v34_v30 }
  0x7c   :  { %v68_v31 = vpop.permute.xlu1 %67  ;;  %v66_v32 = vpop.permute.xlu0 %65 }
  0x7d   :  { %v71_v33 = vsel %vm69_vm2, %v66_v32, %v68_v31 }
  0x7e   :  { %75 = vst [vmem:[#allocation2 + $0x28] sm:$0xf0] %v71_v33 }
  0x80   :  { %v186_v34 = vpop.permute.xlu1 %185  ;;  %v184_v35 = vpop.permute.xlu0 %183 }
  0x81   :  { %v188_v36 = vsel %vm32_vm1, %v184_v35, %v186_v34  ;;  %v317_v40 = vld [vmem:[#allocation2 + $0x8] sm:$0xff] }
  0x82   :  { %192 = vst [vmem:[#allocation2 + $0x18] sm:$0xf0] %v188_v36 }
  0x84   :  { %v203_v37 = vpop.permute.xlu1 %202  ;;  %v201_v38 = vpop.permute.xlu0 %200 }
  0x85   :  { %v205_v39 = vsel %vm50_vm0, %v201_v38, %v203_v37  ;;  %v321_v41 = vld [vmem:[#allocation2 + $0x28] sm:$0xff] }
  0x86   :  { %209 = vst [vmem:[#allocation2 + $0x38] sm:$0xf] %v205_v39  ;;  %v539_v42 = vpack.c.bf16 %v321_v41, %v317_v40 }
  0x88   :  { %v221_v43 = vpop.permute.xlu1 %220  ;;  %v219_v44 = vpop.permute.xlu0 %218  ;;  %540 = vmatprep.subr.bf16.mxu0 %v539_v42 }
  0x89   :  { %v223_v45 = vsel %vm69_vm2, %v219_v44, %v221_v43  ;;  %v319_v54 = vld [vmem:[#allocation2 + $0x18] sm:$0xff] }
  0x8a   :  { %227 = vst [vmem:[#allocation2 + $0x38] sm:$0xf0] %v223_v45 }
  0x8c   :  { %v45_v46 = vpop.permute.xlu1 %44  ;;  %v27_v47 = vpop.permute.xlu0 %26 }
  0x8d   :  { %v51_v48 = vsel %vm50_vm0, %v45_v46, %v47_v27  ;;  %v33_v49 = vsel %vm32_vm1, %v27_v47, %v29_v26 }
  0x8e   :  { %55 = vst [vmem:[#allocation2 + $0x20] sm:$0xf] %v51_v48  ;;  %37 = vst [vmem:[#allocation2] sm:$0xf0] %v33_v49 }
  0x90   :  { %v182_v50 = vpop.permute.xlu1 %181  ;;  %v64_v51 = vpop.permute.xlu0 %63 }
  0x91   :  { %v187_v52 = vsel %vm32_vm1, %v182_v50, %v184_v35  ;;  %v70_v53 = vsel %vm69_vm2, %v64_v51, %v66_v32  ;;  %v323_v55 = vld [vmem:[#allocation2 + $0x38] sm:$0xff] }
  0x92   :  { %191 = vst [vmem:[#allocation2 + $0x10] sm:$0xf0] %v187_v52  ;;  %74 = vst [vmem:[#allocation2 + $0x20] sm:$0xf0] %v70_v53  ;;  %v547_v56 = vpack.c.bf16 %v323_v55, %v319_v54 }
  0x94   :  { %v217_v57 = vpop.permute.xlu1 %216  ;;  %548 = vmatprep.subr.bf16.mxu1 %v547_v56  ;;  %v199_v58 = vpop.permute.xlu0 %198 }
  0x95   :  { %v222_v59 = vsel %vm69_vm2, %v217_v57, %v219_v44  ;;  %v204_v60 = vsel %vm50_vm0, %v199_v58, %v201_v38  ;;  %v316_v0 = vld [vmem:[#allocation2] sm:$0xff] }
  0x96   :  { %226 = vst [vmem:[#allocation2 + $0x30] sm:$0xf0] %v222_v59  ;;  %208 = vst [vmem:[#allocation2 + $0x30] sm:$0xf] %v204_v60 }
  0x98   :  { %v86_v61 = vpop.permute.xlu1 %85  ;;  %v84_v62 = vpop.permute.xlu0 %83 }
  0x99   :  { %v89_v63 = vsel %vm87_vm3, %v84_v62, %v86_v61  ;;  %v320_v1 = vld [vmem:[#allocation2 + $0x20] sm:$0xff]  ;;  %v318_v6 = vld [vmem:[#allocation2 + $0x10] sm:$0xff] }
  0x9a   :  { %93 = vst [vmem:[#allocation2 + $0x48] sm:$0xf] %v89_v63  ;;  %v541_v2 = vpack.c.bf16 %v320_v1, %v316_v0 }
  0x9c   :  { %v105_v3 = vpop.permute.xlu1 %104  ;;  %v103_v4 = vpop.permute.xlu0 %102  ;;  %542 = vmatpush1.bf16.msra.mxu0 %v541_v2 }
  0x9d   :  { %v108_v5 = vsel %vm106_vm4, %v103_v4, %v105_v3  ;;  %v322_v7 = vld [vmem:[#allocation2 + $0x30] sm:$0xff]  ;;  %v315_v3 = vld [vmem:[%s774_s1] sm:$0xff] }
  0x9e   :  { %112 = vst [vmem:[#allocation2 + $0x48] sm:$0xf0] %v108_v5  ;;  %v549_v8 = vpack.c.bf16 %v322_v7, %v318_v6 }
  0xa0   :  { %v123_v9 = vpop.permute.xlu1 %122  ;;  %550 = vmatpush1.bf16.msra.mxu1 %v549_v8  ;;  %v121_v10 = vpop.permute.xlu0 %120 }
  0xa1   :  { %v126_v11 = vsel %vm124_vm5, %v121_v10, %v123_v9 }
  0xa2   :  { %130 = vst [vmem:[#allocation2 + $0x68] sm:$0xf] %v126_v11 }
  0xa4   :  { %v142_v12 = vpop.permute.xlu1 %141  ;;  %v140_v13 = vpop.permute.xlu0 %139 }
  0xa5   :  { %v145_v14 = vsel %vm143_vm6, %v140_v13, %v142_v12  ;;  %v325_v21 = vld [vmem:[#allocation2 + $0x48] sm:$0xff] }
  0xa6   :  { %149 = vst [vmem:[#allocation2 + $0x68] sm:$0xf0] %v145_v14 }
  0xa8   :  { %v238_v15 = vpop.permute.xlu1 %237  ;;  %v236_v16 = vpop.permute.xlu0 %235 }
  0xa9   :  { %v240_v17 = vsel %vm87_vm3, %v236_v16, %v238_v15 }
  0xaa   :  { %244 = vst [vmem:[#allocation2 + $0x58] sm:$0xf] %v240_v17 }
  0xac   :  { %v256_v18 = vpop.permute.xlu1 %255  ;;  %v254_v19 = vpop.permute.xlu0 %253 }
  0xad   :  { %v258_v20 = vsel %vm106_vm4, %v254_v19, %v256_v18  ;;  %v329_v22 = vld [vmem:[#allocation2 + $0x68] sm:$0xff] }
  0xae   :  { %262 = vst [vmem:[#allocation2 + $0x58] sm:$0xf0] %v258_v20  ;;  %v543_v23 = vpack.c.bf16 %v329_v22, %v325_v21 }
  0xb0   :  { %v273_v24 = vpop.permute.xlu1 %272  ;;  %v271_v25 = vpop.permute.xlu0 %270  ;;  %544 = vmatprep.subr.bf16.mxu0 %v543_v23 }
  0xb1   :  { %v275_v26 = vsel %vm124_vm5, %v271_v25, %v273_v24 }
  0xb2   :  { %279 = vst [vmem:[#allocation2 + $0x78] sm:$0xf] %v275_v26 }
  0xb4   :  { %v291_v27 = vpop.permute.xlu1 %290  ;;  %v289_v28 = vpop.permute.xlu0 %288 }
  0xb5   :  { %v293_v29 = vsel %vm143_vm6, %v289_v28, %v291_v27  ;;  %v327_v38 = vld [vmem:[#allocation2 + $0x58] sm:$0xff] }
  0xb6   :  { %297 = vst [vmem:[#allocation2 + $0x78] sm:$0xf0] %v293_v29 }
  0xb8   :  { %v101_v30 = vpop.permute.xlu1 %100  ;;  %v82_v31 = vpop.permute.xlu0 %81 }
  0xb9   :  { %v107_v32 = vsel %vm106_vm4, %v101_v30, %v103_v4  ;;  %v88_v33 = vsel %vm87_vm3, %v82_v31, %v84_v62 }
  0xba   :  { %111 = vst [vmem:[#allocation2 + $0x40] sm:$0xf0] %v107_v32  ;;  %92 = vst [vmem:[#allocation2 + $0x40] sm:$0xf] %v88_v33 }
  0xbc   :  { %v138_v34 = vpop.permute.xlu1 %137  ;;  %v119_v35 = vpop.permute.xlu0 %118 }
  0xbd   :  { %v144_v36 = vsel %vm143_vm6, %v138_v34, %v140_v13  ;;  %v125_v37 = vsel %vm124_vm5, %v119_v35, %v121_v10  ;;  %v331_v39 = vld [vmem:[#allocation2 + $0x78] sm:$0xff] }
  0xbe   :  { %148 = vst [vmem:[#allocation2 + $0x60] sm:$0xf0] %v144_v36  ;;  %129 = vst [vmem:[#allocation2 + $0x60] sm:$0xf] %v125_v37  ;;  %v551_v40 = vpack.c.bf16 %v331_v39, %v327_v38 }
  0xc0   :  { %v252_v41 = vpop.permute.xlu1 %251  ;;  %552 = vmatprep.subr.bf16.mxu1 %v551_v40  ;;  %v234_v42 = vpop.permute.xlu0 %233 }
  0xc1   :  { %v257_v43 = vsel %vm106_vm4, %v252_v41, %v254_v19  ;;  %v239_v44 = vsel %vm87_vm3, %v234_v42, %v236_v16  ;;  %v324_v49 = vld [vmem:[#allocation2 + $0x40] sm:$0xff] }
  0xc2   :  { %261 = vst [vmem:[#allocation2 + $0x50] sm:$0xf0] %v257_v43  ;;  %243 = vst [vmem:[#allocation2 + $0x50] sm:$0xf] %v239_v44 }
  0xc4   :  { %v287_v45 = vpop.permute.xlu1 %286  ;;  %v269_v46 = vpop.permute.xlu0 %268 }
  0xc5   :  { %v292_v47 = vsel %vm143_vm6, %v287_v45, %v289_v28  ;;  %v274_v48 = vsel %vm124_vm5, %v269_v46, %v271_v25  ;;  %v328_v50 = vld [vmem:[#allocation2 + $0x60] sm:$0xff] }
  0xc6   :  { %296 = vst [vmem:[#allocation2 + $0x70] sm:$0xf0] %v292_v47  ;;  %278 = vst [vmem:[#allocation2 + $0x70] sm:$0xf] %v274_v48  ;;  %v545_v51 = vpack.c.bf16 %v328_v50, %v324_v49 }
  0xc8   :  { %v160_v52 = vpop.permute.xlu1 %159  ;;  %v158_v53 = vpop.permute.xlu0 %157  ;;  %546 = vmatpush1.bf16.msra.mxu0 %v545_v51 }
  0xc9   :  { %v163_v54 = vsel %vm161_vm7, %v158_v53, %v160_v52  ;;  %v326_v58 = vld [vmem:[#allocation2 + $0x50] sm:$0xff] }
  0xca   :  { %167 = vst [vmem:[#allocation2 + $0x88] sm:$0xf] %v163_v54 }
  0xcc   :  { %v308_v55 = vpop.permute.xlu1 %307  ;;  %v306_v56 = vpop.permute.xlu0 %305 }
  0xcd   :  { %v310_v57 = vsel %vm161_vm7, %v306_v56, %v308_v55  ;;  %v330_v59 = vld [vmem:[#allocation2 + $0x70] sm:$0xff] }
  0xce   :  { %314 = vst [vmem:[#allocation2 + $0x98] sm:$0xf] %v310_v57  ;;  %v553_v60 = vpack.c.bf16 %v330_v59, %v326_v58 }
  0xd0   :  { %v304_v61 = vpop.permute.xlu1 %303  ;;  %554 = vmatpush1.bf16.msra.mxu1 %v553_v60  ;;  %v156_v62 = vpop.permute.xlu0 %155 }
  0xd1   :  { %v309_v63 = vsel %vm161_vm7, %v304_v61, %v306_v56  ;;  %v162_v0 = vsel %vm161_vm7, %v156_v62, %v158_v53  ;;  %v333_v1 = vld [vmem:[#allocation2 + $0x88] sm:$0xf] }
  0xd2   :  { %313 = vst [vmem:[#allocation2 + $0x90] sm:$0xf] %v309_v63  ;;  %166 = vst [vmem:[#allocation2 + $0x80] sm:$0xf] %v162_v0  ;;  %531 = vmatprep.subr.msk.mxu0 %vm346_vm8, %v333_v1 }
  0xd5   :  { %v335_v2 = vld [vmem:[#allocation2 + $0x98] sm:$0xf] }
  0xd6   :  { %534 = vmatprep.subr.msk.mxu1 %vm346_vm8, %v335_v2 }
  0xd9   :  { %v332_v4 = vld [vmem:[#allocation2 + $0x80] sm:$0xf]  ;;  %v334_v5 = vld [vmem:[#allocation2 + $0x90] sm:$0xf] }
  0xda   :  { %532 = vmatpush1.msk.msra.mxu0 %vm346_vm8, %v332_v4  ;;  %535 = vmatpush1.msk.msra.mxu1 %vm346_vm8, %v334_v5 }
  0xdb   :  { %533 = vmatmul.mubr.msk.f32.vlgmr.msra.gmra.mrb[0].mxu0 %vm342_vm9, %v315_v3  ;;  %536 = vmatmul.mubr.msk.f32.vlgmr.msra.gmra.mrb[0].mxu1 %vm342_vm9, %v315_v3 }
  0xe1   :  { %v340_v6 = vpop.permute.xlu0 %339 }
 0x1ae   :  { %v496_v7 = vpop.f32.mrb[0].mxu1  ;;  %v425_v8 = vpop.f32.mrb[0].mxu0 }
 0x1af   :  { %v497_v9 = vadd.f32 %v496_v7, %v340_v6  ;;  %v426_v10 = vadd.f32 %v425_v8, %v340_v6  ;;  %v427_v11 = vpop.f32.mrb[1].mxu0  ;;  %v498_v12 = vpop.f32.mrb[1].mxu1 }
 0x1b0   :  { %v428_v13 = vadd.f32 %v427_v11, %v340_v6  ;;  %v499_v14 = vadd.f32 %v498_v12, %v340_v6 }
 0x1b1   :  { %v503_v15 = vmax.f32 %v497_v9, 0.0  ;;  %v501_v16 = vmax.f32 %v426_v10, 0.0 }
 0x1b2   :  { %v502_v17 = vmax.f32 %v428_v13, 0.0  ;;  %v504_v18 = vmax.f32 %v499_v14, 0.0 }
 0x1b3   :  { %537 = vst [vmem:[%s775_s3 + $0x10] sm:$0xff] %v503_v15  ;;  %505 = vst [vmem:[%s775_s3] sm:$0xff] %v501_v16 }
 0x1b4   :  { %506 = vst [vmem:[%s775_s3 + $0x8] sm:$0xff] %v502_v17  ;;  %538 = vst [vmem:[%s775_s3 + $0x18] sm:$0xff] %v504_v18 }

</bundles_post_ra>
